<compile_context>
chip_gen: v7x
topology: tpu7x:2x2x1
jax: 0.10.0
libtpu: 0.0.40
codegen_flags: <defaults>
</compile_context>

<pallas_src>
import jax
import jax.numpy as jnp
from jax.experimental import pallas as pl
from jax.experimental.pallas import tpu as pltpu


def _outconv_kernel(w_ref, b_ref, x_ref, o_ref):
    # w_ref: SMEM (C_out, C_in) f32 scalars
    # b_ref: SMEM (C_out,)      f32 scalars
    # x_ref: VMEM (C_in, TILE_S, 128)
    # o_ref: VMEM (C_out, TILE_S, 128)
    c_in = x_ref.shape[0]
    c_out = o_ref.shape[0]
    for co in range(c_out):                      # static unroll; C_out is tiny
        acc = x_ref[0].astype(jnp.float32) * w_ref[co, 0] + b_ref[co]
        for ci in range(1, c_in):
            acc = acc + x_ref[ci].astype(jnp.float32) * w_ref[co, ci]
        o_ref[co] = acc.astype(o_ref.dtype)


def outconv_1x1(x_nchw, weight, bias, *, tile_pixels=131072):
    """1x1 Conv2d forward (PyTorch semantics) via a Pallas VPU kernel.

    Args:
      x_nchw: (N, C_in, H, W) input.
      weight: (C_out, C_in, 1, 1) Conv2d weight.
      bias:   (C_out,) Conv2d bias.
      tile_pixels: requested pixels per grid step (rounded to the hardware
                   (8, 128) tiling and capped by a VMEM budget).
    Returns:
      (N, C_out, H, W) output, dtype of x.
    """
    N, C_in, H, W = x_nchw.shape
    C_out = weight.shape[0]
    HW = H * W
    out_dtype = x_nchw.dtype

    # Tiny parameter tensors -> f32 scalars in SMEM.
    w2d = weight.reshape(C_out, C_in).astype(jnp.float32)
    b1d = bias.reshape(C_out).astype(jnp.float32)

    # Free reshape to channel-major pixel stream; pad only if HW % 128 != 0.
    x3d = x_nchw.reshape(N, C_in, HW)
    HW_pad = pl.cdiv(HW, 128) * 128
    if HW_pad != HW:
        # TODO(synk): a masked-tail kernel would avoid this extra HBM copy;
        # UNet spatial extents are normally multiples of 128 pixels.
        x3d = jnp.pad(x3d, ((0, 0), (0, 0), (0, HW_pad - HW)))
    S = HW_pad // 128
    x4d = x3d.reshape(N, C_in, S, 128)

    itemsize = x4d.dtype.itemsize
    out_itemsize = jnp.dtype(out_dtype).itemsize

    # ---- pixel-tile sizing: DMA-bound, so go big but stay inside VMEM -----
    if S <= 8:
        tile_s = S                                    # full (tiny) extent
    else:
        # Double-buffered (in + out) tile budget, safe on v7x's 64 MiB VMEM
        # and comfortably so on v5e/v6e's 128 MiB.
        vmem_tile_budget = 24 << 20
        per_srow = (C_in * itemsize + C_out * out_itemsize) * 128
        max_s_vmem = max(8, (vmem_tile_budget // (2 * per_srow)) // 8 * 8)
        tile_s = min(max(tile_pixels // 128, 8), max_s_vmem, (S // 8) * 8)
        tile_s = max(8, (tile_s // 8) * 8)
        if N < 2:
            # v7x megacore: keep >=4 grid steps on the parallel spatial axis
            # when the batch axis can't provide the parallelism.
            tile_s = min(tile_s, max(8, pl.cdiv(pl.cdiv(S, 4), 8) * 8))

    grid = (N, pl.cdiv(S, tile_s))

    # ---- VMEM accounting (sublane-padding corrected) -----------------------
    tile_s_pad = max(8, pl.cdiv(tile_s, 8) * 8)
    x_tile_bytes = C_in * tile_s_pad * 128 * itemsize
    o_tile_bytes = C_out * tile_s_pad * 128 * out_itemsize
    vmem_needed = 2 * (x_tile_bytes + o_tile_bytes) + (4 << 20)
    vmem_limit = int(min(max(vmem_needed, 16 << 20), 48 << 20))

    cost = pl.CostEstimate(
        flops=2 * N * HW_pad * C_in * C_out,
        transcendentals=0,
        bytes_accessed=(x4d.size * itemsize
                        + w2d.size * 4 + b1d.size * 4
                        + N * C_out * HW_pad * out_itemsize),
    )

    out4d = pl.pallas_call(
        _outconv_kernel,
        out_shape=jax.ShapeDtypeStruct((N, C_out, S, 128), out_dtype),
        grid_spec=pltpu.PrefetchScalarGridSpec(
            num_scalar_prefetch=0,
            grid=grid,
            in_specs=[
                # Weights / bias: whole (tiny) arrays resident in SMEM.
                pl.BlockSpec(memory_space=pltpu.MemorySpace.SMEM),
                pl.BlockSpec(memory_space=pltpu.MemorySpace.SMEM),
                # Activations: batch dim squeezed, dense (C_in, TILE_S, 128) block.
                pl.BlockSpec((None, C_in, tile_s, 128),
                             lambda n, j: (n, 0, j, 0)),
            ],
            out_specs=pl.BlockSpec((None, C_out, tile_s, 128),
                                   lambda n, j: (n, 0, j, 0)),
        ),
        compiler_params=pltpu.CompilerParams(
            dimension_semantics=("parallel", "parallel"),
            vmem_limit_bytes=vmem_limit,
        ),
        cost_estimate=cost,
    )(w2d, b1d, x4d)

    out = out4d.reshape(N, C_out, HW_pad)
    if HW_pad != HW:
        out = out[:, :, :HW]
    return out.reshape(N, C_out, H, W)


def _reference(x_nchw, weight, bias):
    # Pure-JAX reference: conv 1x1 == einsum over channel dim.
    w2d = weight.reshape(weight.shape[0], weight.shape[1])  # (C_out, C_in)
    y = jnp.einsum("nchw,oc->nohw", x_nchw, w2d) + bias[None, :, None, None]
    return y


if __name__ == "__main__":
    key = jax.random.PRNGKey(0)
    k_x, k_w, k_b = jax.random.split(key, 3)

    N, C_in, C_out, H, W = 2, 4, 3, 16, 16

    x = jax.random.normal(k_x, (N, C_in, H, W), dtype=jnp.float32)

    # Deterministic parameter init (mimics Conv2d's uniform fan-in init).
    fan_in = C_in * 1 * 1
    bound = 1.0 / (fan_in ** 0.5)
    weight = jax.random.uniform(
        k_w, (C_out, C_in, 1, 1), minval=-bound, maxval=bound, dtype=jnp.float32)
    bias = jax.random.uniform(
        k_b, (C_out,), minval=-bound, maxval=bound, dtype=jnp.float32)

    y = outconv_1x1(x, weight, bias)
    y = jax.block_until_ready(y)

    y_ref = _reference(x, weight, bias)
    assert y.shape == (N, C_out, H, W), y.shape
    assert jnp.allclose(y, y_ref, atol=1e-5, rtol=1e-5), "mismatch vs reference"

    print("KERNEL_OK")
</pallas_src>

<mosaic_0001>
module attributes {stable_mosaic.version = 11 : i64} {
  func.func @_outconv_kernel(%arg0: i32, %arg1: i32, %arg2: memref<3x4xf32, #tpu.memory_space<smem>>, %arg3: memref<3xf32, #tpu.memory_space<smem>>, %arg4: memref<1x4x2x128xf32, #tpu.memory_space<vmem>>, %arg5: memref<1x3x2x128xf32, #tpu.memory_space<vmem>>) attributes {dimension_semantics = [#tpu.dimension_semantics<parallel>, #tpu.dimension_semantics<parallel>], iteration_bounds = array<i64: 2, 1>, scalar_prefetch = 0 : i64, scratch_operands = 0 : i64, tpu.core_type = #tpu.core_type<tc>, window_params = [{transform_indices = @transform_0, window_bounds = array<i64: 3, 4>}, {transform_indices = @transform_1, window_bounds = array<i64: 3>}, {transform_indices = @transform_2, window_bounds = array<i64: 1, 4, 2, 128>}, {transform_indices = @transform_3, window_bounds = array<i64: 1, 3, 2, 128>}]} {
    %c0 = arith.constant 0 : index
    %c0_0 = arith.constant 0 : index
    %c0_1 = arith.constant 0 : index
    %c0_2 = arith.constant 0 : index
    %0 = vector.load %arg4[%c0, %c0_0, %c0_1, %c0_2] : memref<1x4x2x128xf32, #tpu.memory_space<vmem>>, vector<1x1x2x128xf32>
    %1 = vector.shape_cast %0 : vector<1x1x2x128xf32> to vector<2x128xf32>
    %c0_3 = arith.constant 0 : index
    %c0_4 = arith.constant 0 : index
    %2 = memref.load %arg2[%c0_3, %c0_4] : memref<3x4xf32, #tpu.memory_space<smem>>
    %3 = vector.broadcast %2 : f32 to vector<2x128xf32>
    %4 = arith.mulf %1, %3 : vector<2x128xf32>
    %c0_5 = arith.constant 0 : index
    %5 = memref.load %arg3[%c0_5] : memref<3xf32, #tpu.memory_space<smem>>
    %6 = vector.broadcast %5 : f32 to vector<2x128xf32>
    %7 = arith.addf %4, %6 : vector<2x128xf32>
    %c0_6 = arith.constant 0 : index
    %c1 = arith.constant 1 : index
    %c0_7 = arith.constant 0 : index
    %c0_8 = arith.constant 0 : index
    %8 = vector.load %arg4[%c0_6, %c1, %c0_7, %c0_8] : memref<1x4x2x128xf32, #tpu.memory_space<vmem>>, vector<1x1x2x128xf32>
    %9 = vector.shape_cast %8 : vector<1x1x2x128xf32> to vector<2x128xf32>
    %c0_9 = arith.constant 0 : index
    %c1_10 = arith.constant 1 : index
    %10 = memref.load %arg2[%c0_9, %c1_10] : memref<3x4xf32, #tpu.memory_space<smem>>
    %11 = vector.broadcast %10 : f32 to vector<2x128xf32>
    %12 = arith.mulf %9, %11 : vector<2x128xf32>
    %13 = arith.addf %7, %12 : vector<2x128xf32>
    %c0_11 = arith.constant 0 : index
    %c2 = arith.constant 2 : index
    %c0_12 = arith.constant 0 : index
    %c0_13 = arith.constant 0 : index
    %14 = vector.load %arg4[%c0_11, %c2, %c0_12, %c0_13] : memref<1x4x2x128xf32, #tpu.memory_space<vmem>>, vector<1x1x2x128xf32>
    %15 = vector.shape_cast %14 : vector<1x1x2x128xf32> to vector<2x128xf32>
    %c0_14 = arith.constant 0 : index
    %c2_15 = arith.constant 2 : index
    %16 = memref.load %arg2[%c0_14, %c2_15] : memref<3x4xf32, #tpu.memory_space<smem>>
    %17 = vector.broadcast %16 : f32 to vector<2x128xf32>
    %18 = arith.mulf %15, %17 : vector<2x128xf32>
    %19 = arith.addf %13, %18 : vector<2x128xf32>
    %c0_16 = arith.constant 0 : index
    %c3 = arith.constant 3 : index
    %c0_17 = arith.constant 0 : index
    %c0_18 = arith.constant 0 : index
    %20 = vector.load %arg4[%c0_16, %c3, %c0_17, %c0_18] : memref<1x4x2x128xf32, #tpu.memory_space<vmem>>, vector<1x1x2x128xf32>
    %21 = vector.shape_cast %20 : vector<1x1x2x128xf32> to vector<2x128xf32>
    %c0_19 = arith.constant 0 : index
    %c3_20 = arith.constant 3 : index
    %22 = memref.load %arg2[%c0_19, %c3_20] : memref<3x4xf32, #tpu.memory_space<smem>>
    %23 = vector.broadcast %22 : f32 to vector<2x128xf32>
    %24 = arith.mulf %21, %23 : vector<2x128xf32>
    %25 = arith.addf %19, %24 : vector<2x128xf32>
    %c0_21 = arith.constant 0 : index
    %c0_22 = arith.constant 0 : index
    %c0_23 = arith.constant 0 : index
    %c0_24 = arith.constant 0 : index
    %26 = vector.load %arg5[%c0_21, %c0_22, %c0_23, %c0_24] : memref<1x3x2x128xf32, #tpu.memory_space<vmem>>, vector<1x1x2x128xf32>
    %27 = vector.shape_cast %26 : vector<1x1x2x128xf32> to vector<2x128xf32>
    %28 = vector.shape_cast %25 : vector<2x128xf32> to vector<1x1x2x128xf32>
    tpu.vector_store %arg5[%c0_21, %c0_22, %c0_23, %c0_24], %28 {strides = array<i32>} : memref<1x3x2x128xf32, #tpu.memory_space<vmem>>, vector<1x1x2x128xf32>,
    %c0_25 = arith.constant 0 : index
    %c0_26 = arith.constant 0 : index
    %c0_27 = arith.constant 0 : index
    %c0_28 = arith.constant 0 : index
    %29 = vector.load %arg4[%c0_25, %c0_26, %c0_27, %c0_28] : memref<1x4x2x128xf32, #tpu.memory_space<vmem>>, vector<1x1x2x128xf32>
    %30 = vector.shape_cast %29 : vector<1x1x2x128xf32> to vector<2x128xf32>
    %c1_29 = arith.constant 1 : index
    %c0_30 = arith.constant 0 : index
    %31 = memref.load %arg2[%c1_29, %c0_30] : memref<3x4xf32, #tpu.memory_space<smem>>
    %32 = vector.broadcast %31 : f32 to vector<2x128xf32>
    %33 = arith.mulf %30, %32 : vector<2x128xf32>
    %c1_31 = arith.constant 1 : index
    %34 = memref.load %arg3[%c1_31] : memref<3xf32, #tpu.memory_space<smem>>
    %35 = vector.broadcast %34 : f32 to vector<2x128xf32>
    %36 = arith.addf %33, %35 : vector<2x128xf32>
    %c0_32 = arith.constant 0 : index
    %c1_33 = arith.constant 1 : index
    %c0_34 = arith.constant 0 : index
    %c0_35 = arith.constant 0 : index
    %37 = vector.load %arg4[%c0_32, %c1_33, %c0_34, %c0_35] : memref<1x4x2x128xf32, #tpu.memory_space<vmem>>, vector<1x1x2x128xf32>
    %38 = vector.shape_cast %37 : vector<1x1x2x128xf32> to vector<2x128xf32>
    %c1_36 = arith.constant 1 : index
    %c1_37 = arith.constant 1 : index
    %39 = memref.load %arg2[%c1_36, %c1_37] : memref<3x4xf32, #tpu.memory_space<smem>>
    %40 = vector.broadcast %39 : f32 to vector<2x128xf32>
    %41 = arith.mulf %38, %40 : vector<2x128xf32>
    %42 = arith.addf %36, %41 : vector<2x128xf32>
    %c0_38 = arith.constant 0 : index
    %c2_39 = arith.constant 2 : index
    %c0_40 = arith.constant 0 : index
    %c0_41 = arith.constant 0 : index
    %43 = vector.load %arg4[%c0_38, %c2_39, %c0_40, %c0_41] : memref<1x4x2x128xf32, #tpu.memory_space<vmem>>, vector<1x1x2x128xf32>
    %44 = vector.shape_cast %43 : vector<1x1x2x128xf32> to vector<2x128xf32>
    %c1_42 = arith.constant 1 : index
    %c2_43 = arith.constant 2 : index
    %45 = memref.load %arg2[%c1_42, %c2_43] : memref<3x4xf32, #tpu.memory_space<smem>>
    %46 = vector.broadcast %45 : f32 to vector<2x128xf32>
    %47 = arith.mulf %44, %46 : vector<2x128xf32>
    %48 = arith.addf %42, %47 : vector<2x128xf32>
    %c0_44 = arith.constant 0 : index
    %c3_45 = arith.constant 3 : index
    %c0_46 = arith.constant 0 : index
    %c0_47 = arith.constant 0 : index
    %49 = vector.load %arg4[%c0_44, %c3_45, %c0_46, %c0_47] : memref<1x4x2x128xf32, #tpu.memory_space<vmem>>, vector<1x1x2x128xf32>
    %50 = vector.shape_cast %49 : vector<1x1x2x128xf32> to vector<2x128xf32>
    %c1_48 = arith.constant 1 : index
    %c3_49 = arith.constant 3 : index
    %51 = memref.load %arg2[%c1_48, %c3_49] : memref<3x4xf32, #tpu.memory_space<smem>>
    %52 = vector.broadcast %51 : f32 to vector<2x128xf32>
    %53 = arith.mulf %50, %52 : vector<2x128xf32>
    %54 = arith.addf %48, %53 : vector<2x128xf32>
    %c0_50 = arith.constant 0 : index
    %c1_51 = arith.constant 1 : index
    %c0_52 = arith.constant 0 : index
    %c0_53 = arith.constant 0 : index
    %55 = vector.load %arg5[%c0_50, %c1_51, %c0_52, %c0_53] : memref<1x3x2x128xf32, #tpu.memory_space<vmem>>, vector<1x1x2x128xf32>
    %56 = vector.shape_cast %55 : vector<1x1x2x128xf32> to vector<2x128xf32>
    %57 = vector.shape_cast %54 : vector<2x128xf32> to vector<1x1x2x128xf32>
    tpu.vector_store %arg5[%c0_50, %c1_51, %c0_52, %c0_53], %57 {strides = array<i32>} : memref<1x3x2x128xf32, #tpu.memory_space<vmem>>, vector<1x1x2x128xf32>,
    %c0_54 = arith.constant 0 : index
    %c0_55 = arith.constant 0 : index
    %c0_56 = arith.constant 0 : index
    %c0_57 = arith.constant 0 : index
    %58 = vector.load %arg4[%c0_54, %c0_55, %c0_56, %c0_57] : memref<1x4x2x128xf32, #tpu.memory_space<vmem>>, vector<1x1x2x128xf32>
    %59 = vector.shape_cast %58 : vector<1x1x2x128xf32> to vector<2x128xf32>
    %c2_58 = arith.constant 2 : index
    %c0_59 = arith.constant 0 : index
    %60 = memref.load %arg2[%c2_58, %c0_59] : memref<3x4xf32, #tpu.memory_space<smem>>
    %61 = vector.broadcast %60 : f32 to vector<2x128xf32>
    %62 = arith.mulf %59, %61 : vector<2x128xf32>
    %c2_60 = arith.constant 2 : index
    %63 = memref.load %arg3[%c2_60] : memref<3xf32, #tpu.memory_space<smem>>
    %64 = vector.broadcast %63 : f32 to vector<2x128xf32>
    %65 = arith.addf %62, %64 : vector<2x128xf32>
    %c0_61 = arith.constant 0 : index
    %c1_62 = arith.constant 1 : index
    %c0_63 = arith.constant 0 : index
    %c0_64 = arith.constant 0 : index
    %66 = vector.load %arg4[%c0_61, %c1_62, %c0_63, %c0_64] : memref<1x4x2x128xf32, #tpu.memory_space<vmem>>, vector<1x1x2x128xf32>
    %67 = vector.shape_cast %66 : vector<1x1x2x128xf32> to vector<2x128xf32>
    %c2_65 = arith.constant 2 : index
    %c1_66 = arith.constant 1 : index
    %68 = memref.load %arg2[%c2_65, %c1_66] : memref<3x4xf32, #tpu.memory_space<smem>>
    %69 = vector.broadcast %68 : f32 to vector<2x128xf32>
    %70 = arith.mulf %67, %69 : vector<2x128xf32>
    %71 = arith.addf %65, %70 : vector<2x128xf32>
    %c0_67 = arith.constant 0 : index
    %c2_68 = arith.constant 2 : index
    %c0_69 = arith.constant 0 : index
    %c0_70 = arith.constant 0 : index
    %72 = vector.load %arg4[%c0_67, %c2_68, %c0_69, %c0_70] : memref<1x4x2x128xf32, #tpu.memory_space<vmem>>, vector<1x1x2x128xf32>
    %73 = vector.shape_cast %72 : vector<1x1x2x128xf32> to vector<2x128xf32>
    %c2_71 = arith.constant 2 : index
    %c2_72 = arith.constant 2 : index
    %74 = memref.load %arg2[%c2_71, %c2_72] : memref<3x4xf32, #tpu.memory_space<smem>>
    %75 = vector.broadcast %74 : f32 to vector<2x128xf32>
    %76 = arith.mulf %73, %75 : vector<2x128xf32>
    %77 = arith.addf %71, %76 : vector<2x128xf32>
    %c0_73 = arith.constant 0 : index
    %c3_74 = arith.constant 3 : index
    %c0_75 = arith.constant 0 : index
    %c0_76 = arith.constant 0 : index
    %78 = vector.load %arg4[%c0_73, %c3_74, %c0_75, %c0_76] : memref<1x4x2x128xf32, #tpu.memory_space<vmem>>, vector<1x1x2x128xf32>
    %79 = vector.shape_cast %78 : vector<1x1x2x128xf32> to vector<2x128xf32>
    %c2_77 = arith.constant 2 : index
    %c3_78 = arith.constant 3 : index
    %80 = memref.load %arg2[%c2_77, %c3_78] : memref<3x4xf32, #tpu.memory_space<smem>>
    %81 = vector.broadcast %80 : f32 to vector<2x128xf32>
    %82 = arith.mulf %79, %81 : vector<2x128xf32>
    %83 = arith.addf %77, %82 : vector<2x128xf32>
    %c0_79 = arith.constant 0 : index
    %c2_80 = arith.constant 2 : index
    %c0_81 = arith.constant 0 : index
    %c0_82 = arith.constant 0 : index
    %84 = vector.load %arg5[%c0_79, %c2_80, %c0_81, %c0_82] : memref<1x3x2x128xf32, #tpu.memory_space<vmem>>, vector<1x1x2x128xf32>
    %85 = vector.shape_cast %84 : vector<1x1x2x128xf32> to vector<2x128xf32>
    %86 = vector.shape_cast %83 : vector<2x128xf32> to vector<1x1x2x128xf32>
    tpu.vector_store %arg5[%c0_79, %c2_80, %c0_81, %c0_82], %86 {strides = array<i32>} : memref<1x3x2x128xf32, #tpu.memory_space<vmem>>, vector<1x1x2x128xf32>,
    return
  }
  func.func @transform_0(%arg0: i32, %arg1: i32) -> (i32, i32) {
    %c0_i32 = arith.constant 0 : i32
    %c0_i32_0 = arith.constant 0 : i32
    %c0_i32_1 = arith.constant 0 : i32
    return %c0_i32, %c0_i32_0 : i32, i32
  }
  func.func @transform_1(%arg0: i32, %arg1: i32) -> i32 {
    %c0_i32 = arith.constant 0 : i32
    %c0_i32_0 = arith.constant 0 : i32
    return %c0_i32 : i32
  }
  func.func @transform_2(%arg0: i32, %arg1: i32) -> (i32, i32, i32, i32) {
    %c0_i32 = arith.constant 0 : i32
    %c0_i32_0 = arith.constant 0 : i32
    %c0_i32_1 = arith.constant 0 : i32
    return %arg0, %c0_i32, %arg1, %c0_i32_0 : i32, i32, i32, i32
  }
  func.func @transform_3(%arg0: i32, %arg1: i32) -> (i32, i32, i32, i32) {
    %c0_i32 = arith.constant 0 : i32
    %c0_i32_0 = arith.constant 0 : i32
    %c0_i32_1 = arith.constant 0 : i32
    return %arg0, %c0_i32, %arg1, %c0_i32_0 : i32, i32, i32, i32
  }
}

</mosaic_0001>

<bundles_post_ra>
// kernel: tpu_custom_call.1
= control target key start
LH: loop header
LB: loop body
LE: loop exit
PB: predicated region body
PF: predicated region fallthrough
CT: control target
= control target key end

     0   :  { %8 = vsyncpa [#allocation5], 0  ;;  %s1001_s0 = inlined_call_operand.hbm [shape: f32[3,4], index: 0, kind: input, shape index: {}]   ;;  %s1002_s1 = inlined_call_operand.vmem [shape: f32[3], index: 1, kind: input, shape index: {}]   ;;  %s1003_s2 = inlined_call_operand.hbm [shape: f32[2,4,2,128], index: 2, kind: input, shape index: {}]   ;;  %s1004_s3 = inlined_call_operand.hbm [shape: f32[2,3,2,128], index: 3, kind: output, shape index: {}]  }
   0x1   :  { %9 = vsyncpa [#allocation6], 0 }
   0x2   :  { %10 = vsyncpa [#allocation3], 0 }
   0x3   :  { %12 = vsyncpa [#allocation3 + $0x1], 0 }
   0x4   :  { %13 = vsyncpa [#allocation4], 0 }
   0x5   :  { %15 = vsyncpa [#allocation4 + $0x1], 0  ;;  %s737_s12 = smov 0   ;;  %s739_s13 = smov 0  }
   0x6   :  { %s741_s14 = smov 0   ;;  %s743_s15 = smov 0  }
   0x7   :  { %s745_s16 = smov 0   ;;  %s747_s17 = smov 0  }
   0x8 LB: > { %s429_s18 = sadd.s32 4294967295, %s707_s17   ;;  %s430_s19 = sadd.s32 4294967294, %s707_s17   ;;  %s707_s17 = sphi %s747_s17, %s21_s17   ;;  %s703_s16 = sphi %s745_s16, %s1025_s16   ;;  %s699_s15 = sphi %s743_s15, %s1024_s15   ;;  %s695_s14 = sphi %s741_s14, %s1023_s14   ;;  %s691_s13 = sphi %s739_s13, %s1022_s13   ;;  %s687_s12 = sphi %s737_s12, %s1021_s12  }
   0x9   : > { %s84_s20 = sadd.s32 1, %s695_s14  ;;  %p91_p0 = scmp.ne.s32.totalorder %s695_s14, %s691_s13 }
   0xa   : > { %p92_p1 = scmp.eq.s32.totalorder %s707_s17, 0  ;;  %p97_p2 = scmp.ne.s32.totalorder %s691_s13, %s687_s12 }
   0xb   : > { %p775_p3 = scmp.eq.s32.totalorder %s429_s18, 0  ;;  %p123_p4 = scmp.eq.s32.totalorder %s429_s18, 1 }
   0xc   : > { %p93_p5 = por %p92_p1, %p91_p0  ;;  %p129_p6 = scmp.eq.s32.totalorder %s430_s19, 1 }
   0xd   : > { %s1009_s21 = scalar_select %p775_p3, 1, 0 }
   0xe   : > { %p781_p7 = por %p775_p3, %p97_p2  ;;  %p785_p8 = por %p123_p4, %p91_p0 }
   0xf   : > { %p789_p9 = por %p129_p6, %p97_p2  ;;  %p431_p10 = scmp.ge.s32.totalorder %s707_s17, 1 }
  0x10   : > { %s1010_s22 = scalar_select %p781_p7, 1, 0 }
  0x11   : > { %s1011_s23 = scalar_select %p785_p8, 1, 0 }
  0x12   : > { %s1012_s24 = scalar_select %p789_p9, 1, 0 }
  0x13   : > { %p136_p11 = scmp.lt.s32.totalorder %s707_s17, 3  ;;  %p501_p1 = scmp.lt.s32.totalorder %s707_s17, 2 }
  0x14   : > { %s158_s28 = sshll.u32 %s1002_s1, 4  ;;  %s169_s4 = sand.u32 1, %s695_s14   ;;  %s159_s28 = int_to_ptr.vmem [resolvable:$true] %s158_s28 }
  0x15   : > { %p796_p13 = pnand %p431_p10, %p136_p11  ;;  %p806_p4 = pnand %p501_p1, %p93_p5 }
  0x16   : > { %s33_s5 = sadd.s32 1, %s703_s16  ;;  %s559_s8 = scalar_lea.hbm %s1001_s0, 64 }
  0x17   : > { %p484_p0 = pneg %p796_p13  ;;  %p560_p5 = scmp.ne.s32.totalorder %s1001_s0, %s559_s8 }
  0x18   : > { %p566_p1 = scmp.lt.u32.totalorder %s559_s8, %s1001_s0 }
  0x19   : > { %p812_p2 = pnand %p484_p0, %p775_p3 }
  0x1b   : > { %p561_p6 = pneg %p812_p2 }
  0x1d   : > { %p562_p10 = pnand %p561_p6, %p560_p5 }
  0x1f   : > { %p563_p11 = pneg %p562_p10 }
  0x21   : > { %p568_p0 = pnand %p566_p1, %p563_p11 }
  0x23   : > { %571 = shalt.err (!%p568_p0)
}
  0x24   : > { %s709_s19 = smov [#allocation2]   ;;  %s572_s6 = scalar_lea.vmem %s159_s28, 16 }
  0x25   : > { %487 = dma.hbm_to_smem (!%p812_p2), %s1001_s0, 64, %s709_s19, [#allocation5]  }
  0x26   : > { %p573_p12 = scmp.ne.s32.totalorder %s159_s28, %s572_s6  ;;  %p580_p7 = scmp.lt.s32.totalorder %s159_s28, %s159_s28 }
  0x27   : > { %p581_p5 = scmp.lt.s32.totalorder %s572_s6, %s572_s6 }
  0x28   : > { %p575_p9 = pnand %p573_p12, %p561_p6 }
  0x29   : > { %p582_p10 = por %p581_p5, %p580_p7 }
  0x2a   : > { %p576_p8 = pneg %p575_p9 }
  0x2c   : > { %p583_p3 = pnand %p582_p10, %p576_p8 }
  0x2e   : > { %586 = shalt.err (!%p583_p3)
}
  0x2f   : > { %s710_s7 = smov [#allocation7]   ;;  %p35_p11 = scmp.ge.s32.totalorder %s33_s5, 2 }
  0x30   : > { %490 = dma.vmem_to_smem (!%p812_p2), %s159_s28, 16, %s710_s7, [#allocation6]  }
  0x31   : > { %s435_s8 = sshll.u32 %s169_s4, 3  ;;  %s469_s9 = sshll.u32 %s703_s16, 7 }
  0x32   : > { %s1027_s5 = smov (%p35_p11, %s33_s5), 0  ;;  %s844_s30 = scalar_lea.hbm %s1003_s2, %s469_s9 }
  0x33   : > { %s79_s18 = ssub.s32 %s703_s16, %s1027_s5  ;;  %s173_s19 = scalar_lea.vmem [#allocation8], %s435_s8 }
  0x34   : > { %s181_s28 = sshll.u32 %s173_s19, 4  ;;  %p82_p3 = scmp.eq.s32.totalorder %s79_s18, 0  ;;  %s848_s28 = int_to_ptr.vmem [resolvable:$true] %s181_s28 }
  0x35   : > { %s857_s27 = scalar_lea.sflag [#allocation3], %s169_s4  ;;  %s587_s6 = scalar_lea.hbm %s844_s30, 128 }
  0x36   : > { %s853_s26 = scalar_select %p82_p3, %s695_s14, %s84_s20  }
  0x37   : > { %p588_p7 = scmp.ne.s32.totalorder %s844_s30, %s587_s6  ;;  %p589_p8 = pneg %p806_p4 }
  0x38   : > { %s592_s9 = scalar_lea.hbm %s1003_s2, 256  ;;  %p593_p2 = scmp.lt.u32.totalorder %s844_s30, %s1003_s2 }
  0x39   : > { %p590_p9 = pnand %p589_p8, %p588_p7  ;;  %p594_p6 = scmp.lt.u32.totalorder %s592_s9, %s587_s6 }
  0x3a   : > { %p596_p0 = scmp.lt.u32.totalorder %s587_s6, %s844_s30 }
  0x3b   : > { %p591_p12 = pneg %p590_p9  ;;  %p595_p1 = por %p594_p6, %p593_p2 }
  0x3d   : > { %p597_p5 = por %p596_p0, %p595_p1 }
  0x3f   : > { %p598_p10 = pnand %p597_p5, %p591_p12 }
  0x41   : > { %601 = shalt.err (!%p598_p10)
}
  0x42   : > { %s602_s20 = scalar_lea.vmem %s848_s28, 128  ;;  %s711_s4 = smov [#allocation8]  }
  0x43   : > { %p603_p11 = scmp.ne.s32.totalorder %s848_s28, %s602_s20  ;;  %s607_s18 = sshll.u32 %s711_s4, 4  ;;  %s608_s18 = int_to_ptr.vmem [resolvable:$false] %s607_s18 }
  0x44   : > { %s609_s19 = scalar_lea.vmem %s608_s18, 256  ;;  %p610_p9 = scmp.lt.s32.totalorder %s848_s28, %s608_s18 }
  0x45   : > { %p605_p3 = pnand %p603_p11, %p589_p8  ;;  %p611_p2 = scmp.lt.s32.totalorder %s609_s19, %s602_s20 }
  0x47   : > { %p606_p7 = pneg %p605_p3  ;;  %p612_p6 = por %p611_p2, %p610_p9 }
  0x49   : > { %p613_p1 = pnand %p612_p6, %p606_p7 }
  0x4b   : > { %616 = shalt.err (!%p613_p1)
}
  0x4c   : > { %s712_s6 = smov 32   ;;  %s713_s7 = smov 2  }
  0x4d   : > { %494 = dma.hbm_to_vmem [thread:$0]  (!%p806_p4), %s844_s30, 128, %s848_s28, %s857_s27, %s712_s6, %s712_s6, %s713_s7  }
  0x4e   : > { %193 = sbr.rel (%p796_p13) target bundleno = 132 (0x84), region = 32  ;;  %p1016_p8 = scmp.ne.s32.totalorder (!%p796_p13), %s1009_s21, 0 }
  0x55   : > { %670 = dma.done.wait (%p1016_p8), [#allocation5], 64  }
  0x56   : > { %672 = vsyncadd (%p1016_p8), [#allocation5], 4294967232 }
  0x57   : > { %674 = dma.done.wait (%p1016_p8), [#allocation6], 16  }
  0x58   : > { %676 = vsyncadd (%p1016_p8), [#allocation6], 4294967280  ;;  %s896_s8 = sand.u32 1, %s691_s13   ;;  %p1017_p13 = scmp.ne.s32.totalorder %s1010_s22, 0 }
  0x59   : > { %s441_s25 = sshll.u32 %s896_s8, 3  ;;  %s204_s29 = scalar_lea.sflag [#allocation3], %s896_s8 }
  0x5a   : > { %s900_s30 = scalar_lea.vmem [#allocation8], %s441_s25 }
  0x5b   : > { %678 = dma.done.wait (%p1017_p13), %s204_s29, 128  }
  0x5c   : > { %680 = vsyncadd (%p1017_p13), %s204_s29, 4294967168 }
  0x5d   : > { %212 = sfence }
  0x5e   : > { %s232_s28 = sld [smem:[#allocation2]]  ;;  %s443_s27 = sld [smem:[#allocation2 + $0x1]]  ;;  %v231_v0 = vld [vmem:[%s900_s30] sm:$0x3]  ;;  %v442_v1 = vld [vmem:[%s900_s30 + $0x2] sm:$0x3] }
  0x5f   : > { %s235_s21 = sld [smem:[#allocation7]]  ;;  %s445_s9 = sld [smem:[#allocation2 + $0x2]]  ;;  %v444_v3 = vld [vmem:[%s900_s30 + $0x4] sm:$0x3]  ;;  %v446_v7 = vld [vmem:[%s900_s30 + $0x6] sm:$0x3] }
  0x60   : > { %s447_s10 = sld [smem:[#allocation2 + $0x3]]  ;;  %s448_s11 = sld [smem:[#allocation2 + $0x80]]  ;;  %v257_v10 = vld [vmem:[%s900_s30] sm:$0x3]  ;;  %v450_v14 = vld [vmem:[%s900_s30 + $0x2] sm:$0x3] }
  0x61   : > { %s908_s20 = sld [smem:[#allocation7 + $0x1]]  ;;  %s913_s22 = sld [smem:[#allocation2 + $0x82]]  ;;  %v452_v17 = vld [vmem:[%s900_s30 + $0x4] sm:$0x3]  ;;  %v454_v22 = vld [vmem:[%s900_s30 + $0x6] sm:$0x3] }
  0x62   : > { %s910_s4 = sld [smem:[#allocation2 + $0x81]]  ;;  %s915_s18 = sld [smem:[#allocation2 + $0x83]]  ;;  %v281_v26 = vld [vmem:[%s900_s30] sm:$0x3]  ;;  %v459_v27 = vld [vmem:[%s900_s30 + $0x2] sm:$0x3] }
  0x63   : > { %s918_s19 = sld [smem:[#allocation2 + $0x100]]  ;;  %s920_s6 = sld [smem:[#allocation7 + $0x2]]  ;;  %v461_v35 = vld [vmem:[%s900_s30 + $0x4] sm:$0x3]  ;;  %v463_v41 = vld [vmem:[%s900_s30 + $0x6] sm:$0x3] }
  0x64   : > { %v233_v2 = vstv %s232_s28  ;;  %v241_v6 = vstv %s443_s27  ;;  %s923_s7 = sld [smem:[#allocation2 + $0x101]]  ;;  %s926_s25 = sld [smem:[#allocation2 + $0x102]] }
  0x65   : > { %v234_v4 = vmul.f32 %v233_v2, %v231_v0  ;;  %v236_v5 = vstv %s235_s21  ;;  %v242_v8 = vmul.f32 %v442_v1, %v241_v6  ;;  %v247_v9 = vstv %s445_s9  ;;  %s928_s29 = sld [smem:[#allocation2 + $0x103]]  ;;  %s470_s28 = smul.u32 6, %s896_s8 }
  0x66   : > { %v248_v12 = vmul.f32 %v444_v3, %v247_v9  ;;  %v253_v13 = vstv %s447_s10  ;;  %v259_v16 = vstv %s448_s11  ;;  %s471_s9 = smul.u32 96, %s699_s15  ;;  %p1018_p12 = scmp.ne.s32.totalorder %s1011_s23, 0 }
  0x67   : > { %v237_v11 = vadd.f32 %v236_v5, %v234_v4  ;;  %v254_v15 = vmul.f32 %v446_v7, %v253_v13  ;;  %v260_v19 = vmul.f32 %v259_v16, %v257_v10  ;;  %v262_v20 = vstv %s908_s20  ;;  %s230_s21 = scalar_lea.vmem [#allocation9], %s470_s28  ;;  %s306_s20 = scalar_lea.sflag [#allocation4], %s896_s8 }
  0x68   : > { %v266_v21 = vstv %s910_s4  ;;  %v271_v24 = vstv %s913_s22  ;;  %v276_v25 = vstv %s915_s18  ;;  %s320_s27 = sshll.u32 %s230_s21, 4  ;;  %s952_s11 = scalar_lea.hbm %s1004_s3, %s471_s9  ;;  %s947_s27 = int_to_ptr.vmem [resolvable:$true] %s320_s27 }
  0x69   : > { %v243_v18 = vadd.f32 %v242_v8, %v237_v11  ;;  %v267_v23 = vmul.f32 %v450_v14, %v266_v21  ;;  %v263_v29 = vadd.f32 %v262_v20, %v260_v19  ;;  %v272_v30 = vmul.f32 %v452_v17, %v271_v24  ;;  %s617_s4 = scalar_lea.vmem %s947_s27, 96  ;;  %s714_s15 = smov [#allocation9]  }
  0x6a   : > { %v277_v31 = vmul.f32 %v454_v22, %v276_v25  ;;  %v283_v32 = vstv %s918_s19  ;;  %v286_v33 = vstv %s920_s6  ;;  %v290_v34 = vstv %s923_s7  ;;  %p618_p4 = scmp.ne.s32.totalorder %s947_s27, %s617_s4  ;;  %s621_s22 = sshll.u32 %s714_s15, 4  ;;  %s622_s22 = int_to_ptr.vmem [resolvable:$false] %s621_s22 }
  0x6b   : > { %v249_v28 = vadd.f32 %v248_v12, %v243_v18  ;;  %v268_v37 = vadd.f32 %v267_v23, %v263_v29  ;;  %v284_v38 = vmul.f32 %v283_v32, %v281_v26  ;;  %v291_v39 = vmul.f32 %v459_v27, %v290_v34  ;;  %s623_s18 = scalar_lea.vmem %s622_s22, 192  ;;  %p624_p10 = scmp.lt.s32.totalorder %s947_s27, %s622_s22 }
  0x6c   : > { %v295_v40 = vstv %s926_s25  ;;  %v300_v42 = vstv %s928_s29  ;;  %p619_p0 = pnand %p618_p4, %p1018_p12  ;;  %p625_p11 = scmp.lt.s32.totalorder %s623_s18, %s617_s4 }
  0x6d   : > { %v255_v36 = vadd.f32 %v254_v15, %v249_v28  ;;  %v273_v43 = vadd.f32 %v272_v30, %v268_v37  ;;  %v287_v44 = vadd.f32 %v286_v33, %v284_v38  ;;  %v296_v45 = vmul.f32 %v461_v35, %v295_v40 }
  0x6e   : > { %v301_v48 = vmul.f32 %v463_v41, %v300_v42  ;;  %p620_p5 = pneg %p619_p0  ;;  %p626_p3 = por %p625_p11, %p624_p10 }
  0x6f   : > { %256 = vst [vmem:[%s230_s21] sm:$0x3] %v255_v36  ;;  %v278_v46 = vadd.f32 %v277_v31, %v273_v43  ;;  %v292_v47 = vadd.f32 %v291_v39, %v287_v44 }
  0x70   : > { %p627_p7 = pnand %p626_p3, %p620_p5 }
  0x71   : > { %456 = vst [vmem:[%s230_s21 + $0x2] sm:$0x3] %v278_v46  ;;  %v297_v49 = vadd.f32 %v296_v45, %v292_v47 }
  0x73   : > { %v302_v50 = vadd.f32 %v301_v48, %v297_v49 }
  0x75   : > { %465 = vst [vmem:[%s230_s21 + $0x4] sm:$0x3] %v302_v50 }
  0x76   : > { %630 = shalt.err (!%p627_p7)
}
  0x77   : > { %s631_s19 = scalar_lea.hbm %s952_s11, 96  ;;  %s635_s25 = scalar_lea.hbm %s1004_s3, 192 }
  0x78   : > { %p632_p9 = scmp.ne.s32.totalorder %s952_s11, %s631_s19  ;;  %p636_p1 = scmp.lt.u32.totalorder %s952_s11, %s1004_s3 }
  0x79   : > { %p637_p8 = scmp.lt.u32.totalorder %s635_s25, %s631_s19  ;;  %p639_p4 = scmp.lt.u32.totalorder %s631_s19, %s952_s11 }
  0x7a   : > { %p633_p2 = pnand %p632_p9, %p1018_p12 }
  0x7b   : > { %p638_p13 = por %p637_p8, %p636_p1 }
  0x7c   : > { %p634_p6 = pneg %p633_p2 }
  0x7d   : > { %p640_p0 = por %p639_p4, %p638_p13 }
  0x7f   : > { %p641_p5 = pnand %p640_p0, %p634_p6 }
  0x81   : > { %644 = shalt.err (!%p641_p5)
}
  0x82   : > { %s715_s21 = smov 32   ;;  %s716_s9 = smov 2  }
  0x83   : > { %482 = dma.vmem_to_hbm [thread:$0]  (%p1018_p12), %s947_s27, 96, %s952_s11, %s306_s20, %s715_s21, %s715_s21, %s716_s9  }
  0x84 PF: > { %s335_s30 = sand.u32 1, %s687_s12   ;;  %p1019_p10 = scmp.ne.s32.totalorder %s1012_s24, 0 }
  0x85   : > { %p1020_p11 = scmp.ge.s32.totalorder %s707_s17, 2  ;;  %s336_s10 = scalar_lea.sflag [#allocation4], %s335_s30 }
  0x87   : > { %p496_p3 = pnand %p1020_p11, %p1019_p10 }
  0x89   : > { %682 = dma.done.wait (!%p496_p3), %s336_s10, 96  }
  0x8a   : > { %684 = vsyncadd (!%p496_p3), %s336_s10, 4294967200  ;;  %s21_s17 = sadd.s32 1, %s707_s17   ;;  %s1021_s12 = smov %s691_s13 }
  0x8b   : > { %p18_p7 = scmp.ge.s32.totalorder %s21_s17, 4   ;;  %s1022_s13 = smov %s695_s14 }
  0x8c   : > { %s1023_s14 = smov %s853_s26  ;;  %s1024_s15 = smov %s703_s16 }
  0x8d   : > { %s1025_s16 = smov %s1027_s5  ;;  %20 = sbr.rel (!%p18_p7) target bundleno = 8 (0x8), region = 92 }
  0x94   :  { %341 = vsyncpa [#allocation3], 1 }
  0x95   :  { %343 = vsyncpa [#allocation3 + $0x1], 1 }
  0x96   :  { %344 = vsyncpa [#allocation4], 1 }
  0x97   :  { %346 = vsyncpa [#allocation4 + $0x1], 1 }
  0x98   :  { %347 = vsyncpa [#allocation5], 1 }
  0x99   :  { %349 = vsyncpa [#allocation5 + $0x1], 1 }
  0x9a   :  { %350 = vsyncpa [#allocation6], 1 }
  0x9b   :  { %352 = vsyncpa [#allocation6 + $0x1], 1 }

</bundles_post_ra>
